<compile_context>
chip_gen: v7x
topology: tpu7x:2x2x1
jax: 0.10.0
libtpu: 0.0.40
codegen_flags: <defaults>
</compile_context>

<pallas_src>
import functools
import math

import jax
import jax.numpy as jnp
from jax.experimental import pallas as pl
from jax.experimental.pallas import tpu as pltpu


def _round_up(a, b):
    return ((a + b - 1) // b) * b


def _make_freqs(max_logscale, n_freqs, logscale):
    if logscale:
        return 2.0 ** jnp.linspace(0.0, float(max_logscale), n_freqs)
    return jnp.linspace(1.0, 2.0 ** float(max_logscale), n_freqs)


def _make_table(c, n_freqs, max_logscale, logscale):
    """Per-output-lane metadata, shape (C+3, DC), DC = C*(1+2*n_freqs).

    Rows 0..C-1 : one-hot channel replicator (for the MXU lane-scatter)
    Row  C      : frequency per output lane (1.0 on identity lanes, unused)
    Row  C+1    : phase per output lane (0 for sin, pi/2 for cos)
    Row  C+2    : identity-lane mask (1.0 where the output is x itself)
    """
    d = 1 + 2 * n_freqs
    dc = d * c
    freqs = _make_freqs(max_logscale, n_freqs, logscale).astype(jnp.float32)

    q = jnp.arange(dc)
    g = q // c                                    # function group 0..d-1
    k = jnp.maximum(g - 1, 0) // 2                # frequency index per group
    is_cos = (g >= 1) & (((g - 1) % 2) == 1)

    freq_lane = jnp.where(g == 0, 1.0, freqs[k]).astype(jnp.float32)
    phase_lane = jnp.where(is_cos, math.pi / 2.0, 0.0).astype(jnp.float32)
    ident_lane = (g == 0).astype(jnp.float32)
    onehot = (q[None, :] % c == jnp.arange(c)[:, None]).astype(jnp.float32)

    return jnp.concatenate(
        [onehot, freq_lane[None, :], phase_lane[None, :], ident_lane[None, :]],
        axis=0)


def _pos_embedding_kernel(x_ref, tab_ref, out_ref, *, c):
    """One grid step: TN rows of the flattened input.

    x_ref:   (TN, C)    f32 input rows.
    tab_ref: (C+3, DC)  f32 lane-metadata table (see _make_table).
    out_ref: (TN, DC)   PyTorch-ordered output rows, DC = C*(1+2*N_freqs).
    """
    x = x_ref[...]                            # (TN, C)
    tab = tab_ref[...]                        # (C+3, DC)
    sel = tab[0:c, :]                         # (C, DC) one-hot replicator
    freq = tab[c:c + 1, :]                    # (1, DC)
    phase = tab[c + 1:c + 2, :]               # (1, DC)
    ident = tab[c + 2:c + 3, :]               # (1, DC)

    # Replicate x across the DC output lanes on the MXU (exact: one-hot weights).
    xb = jnp.dot(x, sel, preferred_element_type=jnp.float32)     # (TN, DC)

    # cos(z) = sin(z + pi/2): one fused EUP/VPU sin stream covers both funcs.
    emb = jnp.sin(xb * freq + phase)                              # (TN, DC)

    out = jnp.where(ident > 0.5, xb, emb)     # identity lanes pass x through
    out_ref[...] = out.astype(out_ref.dtype)


def pos_embedding(x, *, max_logscale, N_freqs, logscale=True,
                  tile_n=None, out_dtype=jnp.float32,
                  vmem_block_budget=16 * 1024 * 1024):
    """Pallas PosEmbedding.  x: (..., C) -> (..., C * (1 + 2*N_freqs))."""
    x = jnp.asarray(x, jnp.float32)
    if x.ndim == 0:
        x = x.reshape(1)
    orig_shape = x.shape
    c = int(orig_shape[-1])
    n = x.size // c
    n_freqs = int(N_freqs)
    d = 1 + 2 * n_freqs
    dc = d * c

    x2 = x.reshape(n, c)                                          # free reshape
    tab = _make_table(c, n_freqs, float(max_logscale), bool(logscale))

    # Row-tile size: biggest block whose lane-padded, double-buffered in+out
    # VMEM footprint stays within `vmem_block_budget`, capped at 8192 rows so
    # large inputs still yield several grid blocks for megacore sharding.
    if tile_n is None:
        padded_lanes = _round_up(dc, 128) + 128       # out block + in block
        cap = vmem_block_budget // (8 * padded_lanes)  # 2 bufs * 4 B * lanes
        cap = max(128, min(8192, (cap // 128) * 128))
    else:
        cap = max(8, (int(tile_n) // 8) * 8)

    if n <= cap:
        tn, grid = n, (1,)
    else:
        tn, grid = cap, (pl.cdiv(n, cap),)            # partial edge block is masked

    out = pl.pallas_call(
        functools.partial(_pos_embedding_kernel, c=c),
        out_shape=jax.ShapeDtypeStruct((n, dc), out_dtype),
        grid_spec=pl.GridSpec(
            grid=grid,
            in_specs=[pl.BlockSpec((tn, c), lambda i: (i, 0)),
                      pl.BlockSpec((c + 3, dc), lambda i: (0, 0))],
            out_specs=pl.BlockSpec((tn, dc), lambda i: (i, 0)),
        ),
        compiler_params=pltpu.CompilerParams(
            dimension_semantics=("parallel",),
        ),
    )(x2, tab)

    # Only metadata reshapes remain -- the kernel already wrote PyTorch layout.
    return out.reshape(orig_shape[:-1] + (dc,))


def _reference(x, *, max_logscale, N_freqs, logscale=True):
    x = jnp.asarray(x, jnp.float32)
    freqs = _make_freqs(max_logscale, N_freqs, logscale)
    out = [x]
    for f in freqs:
        out += [jnp.sin(f * x), jnp.cos(f * x)]
    return jnp.concatenate(out, axis=-1)


if __name__ == "__main__":
    max_logscale = 4
    N_freqs = 8
    d = 1 + 2 * N_freqs

    # 1) Small NeRF-style input: 8 points, 3-D coordinates, log-scale freqs.
    key = jax.random.PRNGKey(0)
    x = jax.random.uniform(key, (8, 3), jnp.float32, minval=-1.0, maxval=1.0)
    out = pos_embedding(x, max_logscale=max_logscale, N_freqs=N_freqs,
                        logscale=True)
    out = jax.block_until_ready(out)
    ref = _reference(x, max_logscale=max_logscale, N_freqs=N_freqs,
                     logscale=True)
    assert out.shape == (8, 3 * d), out.shape
    err = float(jnp.max(jnp.abs(out - ref)))
    assert err < 3e-5, err

    # 2) Linear-frequency variant.
    out_lin = pos_embedding(x, max_logscale=max_logscale, N_freqs=N_freqs,
                            logscale=False)
    out_lin = jax.block_until_ready(out_lin)
    ref_lin = _reference(x, max_logscale=max_logscale, N_freqs=N_freqs,
                         logscale=False)
    assert float(jnp.max(jnp.abs(out_lin - ref_lin))) < 3e-5

    # 3) Multi-block grid with a masked partial edge block + extra leading dims:
    #    (50, 4, 3) -> 200 flattened rows, tile of 64 rows -> grid of 4 blocks,
    #    last block only 8 valid rows.
    x2 = jax.random.uniform(jax.random.PRNGKey(1), (50, 4, 3), jnp.float32,
                            minval=-1.0, maxval=1.0)
    out2 = pos_embedding(x2, max_logscale=max_logscale, N_freqs=N_freqs,
                         logscale=True, tile_n=64)
    out2 = jax.block_until_ready(out2)
    ref2 = _reference(x2, max_logscale=max_logscale, N_freqs=N_freqs,
                      logscale=True)
    assert out2.shape == (50, 4, 3 * d), out2.shape
    assert float(jnp.max(jnp.abs(out2 - ref2))) < 3e-5

    print("KERNEL_OK")
</pallas_src>

<mosaic_0001>
module attributes {stable_mosaic.version = 11 : i64} {
  func.func @_pos_embedding_kernel(%arg0: i32, %arg1: memref<8x3xf32, #tpu.memory_space<vmem>>, %arg2: memref<6x51xf32, #tpu.memory_space<vmem>>, %arg3: memref<8x51xf32, #tpu.memory_space<vmem>>) attributes {dimension_semantics = [#tpu.dimension_semantics<parallel>], iteration_bounds = array<i64: 1>, scalar_prefetch = 0 : i64, scratch_operands = 0 : i64, tpu.core_type = #tpu.core_type<tc>, window_params = [{transform_indices = @transform_0, window_bounds = array<i64: 8, 3>}, {pipeline_mode = #tpu.pipeline_mode<synchronous>, transform_indices = @transform_1, window_bounds = array<i64: 6, 51>}, {transform_indices = @transform_2, window_bounds = array<i64: 8, 51>}]} {
    %c0 = arith.constant 0 : index
    %c0_0 = arith.constant 0 : index
    %0 = vector.load %arg1[%c0, %c0_0] : memref<8x3xf32, #tpu.memory_space<vmem>>, vector<8x3xf32>
    %c0_1 = arith.constant 0 : index
    %c0_2 = arith.constant 0 : index
    %1 = vector.load %arg2[%c0_1, %c0_2] : memref<6x51xf32, #tpu.memory_space<vmem>>, vector<6x51xf32>
    %2 = vector.extract_strided_slice %1 {offsets = [0, 0], sizes = [3, 51], strides = [1, 1]} : vector<6x51xf32> to vector<3x51xf32>
    %3 = vector.extract_strided_slice %1 {offsets = [3, 0], sizes = [1, 51], strides = [1, 1]} : vector<6x51xf32> to vector<1x51xf32>
    %4 = vector.extract_strided_slice %1 {offsets = [4, 0], sizes = [1, 51], strides = [1, 1]} : vector<6x51xf32> to vector<1x51xf32>
    %5 = vector.extract_strided_slice %1 {offsets = [5, 0], sizes = [1, 51], strides = [1, 1]} : vector<6x51xf32> to vector<1x51xf32>
    %cst = arith.constant dense<0.000000e+00> : vector<8x51xf32>
    %6 = tpu.matmul %0, %2, %cst {dimension_numbers = #tpu.dot_dimension_numbers<[1], [0], [0], [1], [0, 0, 1, 1], [], []>} : vector<8x3xf32>, vector<3x51xf32>, vector<8x51xf32> -> vector<8x51xf32>
    %7 = vector.broadcast %3 : vector<1x51xf32> to vector<8x51xf32>
    %8 = arith.mulf %6, %7 : vector<8x51xf32>
    %9 = vector.broadcast %4 : vector<1x51xf32> to vector<8x51xf32>
    %10 = arith.addf %8, %9 : vector<8x51xf32>
    %11 = math.sin %10 : vector<8x51xf32>
    %cst_3 = arith.constant 5.000000e-01 : f32
    %12 = vector.broadcast %cst_3 : f32 to vector<1x51xf32>
    %13 = arith.cmpf ogt, %5, %12 : vector<1x51xf32>
    %14 = vector.shape_cast %13 : vector<1x51xi1> to vector<1x51xi1>
    %15 = vector.broadcast %14 : vector<1x51xi1> to vector<8x51xi1>
    %16 = arith.select %15, %6, %11 : vector<8x51xi1>, vector<8x51xf32>
    %c0_4 = arith.constant 0 : index
    %c0_5 = arith.constant 0 : index
    %17 = vector.load %arg3[%c0_4, %c0_5] : memref<8x51xf32, #tpu.memory_space<vmem>>, vector<8x51xf32>
    tpu.vector_store %arg3[%c0_4, %c0_5], %16 {strides = array<i32>} : memref<8x51xf32, #tpu.memory_space<vmem>>, vector<8x51xf32>,
    return
  }
  func.func @transform_0(%arg0: i32) -> (i32, i32) {
    %c0_i32 = arith.constant 0 : i32
    %c0_i32_0 = arith.constant 0 : i32
    return %arg0, %c0_i32 : i32, i32
  }
  func.func @transform_1(%arg0: i32) -> (i32, i32) {
    %c0_i32 = arith.constant 0 : i32
    %c0_i32_0 = arith.constant 0 : i32
    %c0_i32_1 = arith.constant 0 : i32
    return %c0_i32, %c0_i32_0 : i32, i32
  }
  func.func @transform_2(%arg0: i32) -> (i32, i32) {
    %c0_i32 = arith.constant 0 : i32
    %c0_i32_0 = arith.constant 0 : i32
    return %arg0, %c0_i32 : i32, i32
  }
}

</mosaic_0001>

<bundles_post_ra>
// kernel: tpu_custom_call.1
= control target key start
LH: loop header
LB: loop body
LE: loop exit
PB: predicated region body
PF: predicated region fallthrough
CT: control target
= control target key end

     0   :  { %vm18_vm0 = vcmask 1042432   ;;  %v285_v2 = vmov 0.0   ;;  %vm286_vm1 = vmmov 0   ;;  %vm14_vm2 = vcmask 23552   ;;  %s364_s0 = inlined_call_operand.vmem [shape: f32[8,3], index: 0, kind: input, shape index: {}]   ;;  %s365_s1 = inlined_call_operand.vmem [shape: f32[6,51], index: 1, kind: input, shape index: {}]   ;;  %s366_s2 = inlined_call_operand.hbm [shape: f32[8,51], index: 2, kind: output, shape index: {}]  }
   0x1   :  { %v313_v0 = vld [vmem:[%s365_s1] sm:$0x3f]  ;;  %238 = vmatprep.subr.mxu0 %v285_v2  ;;  %240 = vmatprep.mubr.msk.f32.mxu0 %vm286_vm1, %v285_v2 }
   0x2   :  { %v12_v1 = vld [vmem:[%s364_s0] sm:$0xff] }
   0x3   :  { %7 = vsyncpa [#allocation3], 0  ;;  %239 = vmatpush3.msk.msra.mxu0 %vm18_vm0, %v313_v0  ;;  %v92_v3 = vlaneseq  ;;  %v287_v23 = vmov 683565275   ;;  %v288_v25 = vmov 2475754826  }
   0x4   :  { %241 = vmatmul.mubr.msk.f32.vlgmr.msra.gmra.mrb[0].mxu0 %vm14_vm2, %v12_v1  ;;  %v289_v28 = vmov 2131351028   ;;  %v290_v31 = vmov 2102212464   ;;  %v291_v34 = vmov 920167782  }
   0x5   :  { %v319_v4 = vshrl.u32 %v92_v3, 7  ;;  %v292_v37 = vmov 1326507024   ;;  %vm206_vm12 = vcmp.gt.f32.partialorder %v313_v0, 0.5  ;;  %s294_s0 = smov [#allocation2]   ;;  %vm214_vm2 = vcmask 416768  }
   0x6   :  { %s222_s1 = sshll.u32 %s294_s0, 4  ;;  %s223_s1 = int_to_ptr.vmem [resolvable:$true] %s222_s1 }
   0x7   :  { %v94_v5 = vsub.s32 3, %v319_v4  ;;  %v99_v6 = vsub.s32 4, %v319_v4  ;;  %s261_s13 = scalar_lea.vmem %s223_s1, 128  ;;  %p266_p1 = scmp.lt.s32.totalorder %s223_s1, %s223_s1 }
   0x8   :  { %p262_p0 = scmp.ne.s32.totalorder %s223_s1, %s261_s13  ;;  %p267_p2 = scmp.lt.s32.totalorder %s261_s13, %s261_s13 }
   0x9   :  { %v95_v7 = vrot.slane %v313_v0, %v94_v5  ;;  %v100_v8 = vrot.slane %v313_v0, %v99_v6 }
   0xa   :  { %p268_p3 = por %p267_p2, %p266_p1 }
   0xc   :  { %p269_p4 = pnand %p268_p3, %p262_p0 }
  0xd7   :  { %v325_v9 = vpop.f32.mrb[0].mxu0 }
  0xd8   :  { %v96_v10 = vmul.f32 %v95_v7, %v325_v9  ;;  %v242_v11 = vpop.f32.mrb[1].mxu0 }
  0xda   :  { %v328_v12 = vadd.f32 %v100_v8, %v96_v10 }
  0xdc   :  { %v105_v13 = vand.u32 2139095040, %v328_v12  ;;  %v102_v17 = vand.u32 2147483647, %v328_v12  ;;  %vm104_vm10 = vcmp.lt.s32.totalorder %v328_v12, 0  ;;  %vm194_vm1 = vweird.f32 %v328_v12 }
  0xde   :  { %v106_v14 = vshrl.u32 %v105_v13, 23  ;;  %v109_v20 = vand.u32 8388607, %v102_v17  ;;  %vm103_vm11 = vcmp.le.f32.partialorder %v102_v17, 0.7853982 }
  0xe0   :  { %v232_v15 = vadd.s32 4294967169, %v106_v14  ;;  %v110_v39 = vor.u32 8388608, %v109_v20 }
  0xe2   :  { %v112_v16 = vadd.s32 1, %v232_v15  ;;  %v150_v53 = vshll.u32 %v110_v39, 8 }
  0xe4   :  { %vm113_vm3 = vcmp.gt.s32.totalorder %v112_v16, 0 }
  0xe5   :  { %v114_v18 = vsel %vm113_vm3, %v112_v16, 0 }
  0xe6   :  { %v116_v19 = vand.u32 31, %v114_v18  ;;  %v115_v22 = vshrl.u32 %v114_v18, 5 }
  0xe8   :  { %v117_v21 = vsub.s32 32, %v116_v19  ;;  %v119_v24 = vshll.u32 %v287_v23, %v116_v19  ;;  %v122_v26 = vshll.u32 %v288_v25, %v116_v19  ;;  %v125_v30 = vshll.u32 %v289_v28, %v116_v19 }
  0xe9   :  { %v128_v33 = vshll.u32 %v290_v31, %v116_v19  ;;  %v131_v36 = vshll.u32 %v291_v34, %v116_v19  ;;  %vm134_vm4 = vcmp.lt.s32.totalorder %v115_v22, 1  ;;  %vm137_vm5 = vcmp.lt.s32.totalorder %v115_v22, 4 }
  0xea   :  { %v120_v27 = vshrl.u32 %v288_v25, %v117_v21  ;;  %v123_v29 = vshrl.u32 %v289_v28, %v117_v21  ;;  %v126_v32 = vshrl.u32 %v290_v31, %v117_v21  ;;  %v129_v35 = vshrl.u32 %v291_v34, %v117_v21 }
  0xeb   :  { %v132_v38 = vshrl.u32 %v292_v37, %v117_v21  ;;  %v118_v48 = vshrl.u32 %v287_v23, %v117_v21  ;;  %vm136_vm6 = vcmp.lt.s32.totalorder %v115_v22, 3  ;;  %vm135_vm7 = vcmp.lt.s32.totalorder %v115_v22, 2 }
  0xec   :  { %v121_v40 = vor.u32 %v120_v27, %v119_v24  ;;  %v124_v41 = vor.u32 %v123_v29, %v122_v26  ;;  %v127_v42 = vor.u32 %v126_v32, %v125_v30  ;;  %v130_v43 = vor.u32 %v129_v35, %v128_v33 }
  0xed   :  { %v133_v44 = vor.u32 %v132_v38, %v131_v36  ;;  %v210_v36 = vsub.s32 5, %v319_v4  ;;  %v293_v37 = vmov 0  }
  0xee   :  { %v139_v45 = vsel %vm137_vm5, %v127_v42, 2102212464  ;;  %v142_v46 = vsel %vm134_vm4, %v121_v40, %v124_v41  ;;  %v146_v47 = vsel %vm134_vm4, %v124_v41, %v127_v42  ;;  %v143_v49 = vsel %vm137_vm5, %v130_v43, 920167782 }
  0xef   :  { %v147_v50 = vsel %vm137_vm5, %v133_v44, 1326507024  ;;  %v144_v51 = vsel %vm136_vm6, %v127_v42, %v143_v49  ;;  %v138_v54 = vsel %vm134_vm4, %v118_v48, %v121_v40  ;;  %v140_v55 = vsel %vm136_vm6, %v124_v41, %v139_v45 }
  0xf0   :  { %v148_v52 = vsel %vm136_vm6, %v130_v43, %v147_v50  ;;  %v145_v56 = vsel %vm135_vm7, %v142_v46, %v144_v51  ;;  %v141_v62 = vsel %vm135_vm7, %v138_v54, %v140_v55  ;;  %v207_v38 = vsel %vm206_vm12, 1, %v293_v37 }
  0xf1   :  { %v149_v57 = vsel %vm135_vm7, %v146_v47, %v148_v52  ;;  %v337_v60 = vmul.u32.u64.low %v150_v53, %v145_v56  ;;  %v338_v61 = vmul.u32.u64.high %v150_v53, %v145_v56, %v337_v60  ;;  %v157_v1 = vmul.u32 %v150_v53, %v141_v62 }
  0xf2   :  { %v334_v58 = vmul.u32.u64.low %v150_v53, %v149_v57  ;;  %v335_v59 = vmul.u32.u64.high %v150_v53, %v149_v57, %v334_v58  ;;  %v211_v41 = vrot.slane %v207_v38, %v210_v36 }
  0xf3   :  { %v160_v63 = vadd.s32 1, %v338_v61 }
  0xf4   :  { %vm159_vm8 = vc.u32 %v335_v59, %v337_v60  ;;  %v158_v16 = vadd.s32 %v337_v60, %v335_v59  ;;  %vm212_vm0 = vcmp.eq.s32.totalorder %v211_v41, 1 }
  0xf5   :  { %v161_v2 = vsel %vm159_vm8, %v160_v63, %v338_v61 }
  0xf6   :  { %v162_v3 = vadd.s32 %v161_v2, %v157_v1 }
  0xf8   :  { %v163_v5 = vadd.s32 536870912, %v162_v3 }
  0xfa   :  { %v164_v6 = vshrl.u32 %v163_v5, 30 }
  0xfc   :  { %v165_v7 = vshll.u32 %v164_v6, 30  ;;  %v188_v29 = vsub.s32 4, %v164_v6 }
  0xfe   :  { %v166_v8 = vsub.s32 %v162_v3, %v165_v7  ;;  %v189_v32 = vsel %vm104_vm10, %v188_v29, %v164_v6 }
  0xff   :  { %v191_v34 = vsel %vm103_vm11, 0, %v189_v32 }
 0x100   :  { %v168_v10 = vsub.s32 0, %v166_v8  ;;  %v195_v35 = vadd.s32 3, %v191_v34 }
 0x102   :  { %v233_v11 = vmin.u32 %v168_v10, %v166_v8  ;;  %v196_v39 = vand.u32 3, %v195_v35 }
 0x104   :  { %v170_v13 = vclz %v233_v11  ;;  %vm201_vm13 = vcmp.eq.s32.totalorder %v196_v39, 2  ;;  %vm198_vm14 = vcmp.eq.s32.totalorder %v196_v39, 0  ;;  %vm197_vm15 = vcmp.lt.s32.totalorder %v196_v39, 2 }
 0x106   :  { %v234_v14 = vadd.s32 4294967294, %v170_v13 }
 0x108   :  { %vm235_vm9 = vcmp.lt.s32.totalorder %v234_v14, 0 }
 0x109   :  { %v173_v15 = vsel %vm235_vm9, 0, %v234_v14 }
 0x10a   :  { %v174_v18 = vsub.s32 32, %v173_v15  ;;  %v178_v19 = vsub.s32 4294967266, %v173_v15  ;;  %v175_v20 = vshll.u32 %v166_v8, %v173_v15 }
 0x10c   :  { %v176_v21 = vshrl.u32 %v158_v16, %v174_v18  ;;  %v179_v22 = vadd.s32 127, %v178_v19 }
 0x10e   :  { %v177_v23 = vor.u32 %v176_v21, %v175_v20  ;;  %v180_v24 = vshll.u32 %v179_v22, 23 }
 0x110   :  { %v181_v25 = vor.u32 4788187, %v180_v24  ;;  %v184_v27 = vcvt.s32.f32 %v177_v23 }
 0x112   :  { %v182_v26 = vand.u32 2147483647, %v181_v25 }
 0x114   :  { %v185_v28 = vmul.f32 %v184_v27, %v182_v26 }
 0x116   :  { %v186_v30 = vxor.u32 2147483648, %v185_v28 }
 0x118   :  { %v187_v31 = vsel %vm104_vm10, %v186_v30, %v185_v28 }
 0x119   :  { %v190_v33 = vsel %vm103_vm11, %v328_v12, %v187_v31 }
 0x11a   :  { %257 = vcosq.f32 %v190_v33 }
 0x11b   :  { %259 = vsinq.f32 %v190_v33 }
 0x124   :  { %v258_v40 = vpop.eup %257 }
 0x125   :  { %v260_v42 = vpop.eup %259  ;;  %v202_v43 = vxor.u32 2147483648, %v258_v40 }
 0x126   :  { %v199_v17 = vxor.u32 2147483648, %v260_v42 }
 0x127   :  { %v203_v44 = vsel %vm201_vm13, %v202_v43, %v260_v42 }
 0x128   :  { %v200_v45 = vsel %vm198_vm14, %v258_v40, %v199_v17 }
 0x129   :  { %v204_v0 = vsel %vm197_vm15, %v200_v45, %v203_v44 }
 0x12a   :  { %v205_v4 = vsel %vm194_vm1, nan, %v204_v0 }
 0x12b   :  { %v213_v46 = vsel %vm212_vm0, %v325_v9, %v205_v4 }
 0x12c   :  { %215 = vst.msk [vmem:[#allocation2] sm:$0xff] %vm214_vm2, %v213_v46 }
 0x12d   :  { %272 = shalt.err (!%p269_p4)
}
 0x12e   :  { %s273_s16 = scalar_lea.hbm %s366_s2, 128 }
 0x12f   :  { %p274_p5 = scmp.ne.s32.totalorder %s366_s2, %s273_s16  ;;  %p277_p6 = scmp.lt.u32.totalorder %s273_s16, %s366_s2 }
 0x131   :  { %p279_p7 = pnand %p277_p6, %p274_p5 }
 0x133   :  { %282 = shalt.err (!%p279_p7)
}
 0x134   :  { %225 = dma.vmem_to_hbm [thread:$0]  %s223_s1, 128, %s366_s2, [#allocation3]  }
 0x135   :  { %283 = dma.done.wait [#allocation3], 128  }
 0x136   :  { %284 = vsyncadd [#allocation3], 4294967168 }
 0x137   :  { %229 = vsyncpa [#allocation3], 1 }

</bundles_post_ra>
